<compile_context>
chip_gen: v5e
topology: v5e:2x2
jax: 0.10.0
libtpu: 0.0.40
codegen_flags: <defaults>
</compile_context>

<pallas_src>
import jax
import jax.numpy as jnp
from jax import lax
from jax.experimental import pallas as pl
from jax.experimental.pallas import tpu as pltpu

_LANES = 128


def _mix32(x):
    """splitmix/murmur-style 32-bit integer finalizer (good avalanche)."""
    x = x ^ (x >> 16)
    x = x * jnp.uint32(0x7FEB352D)
    x = x ^ (x >> 15)
    x = x * jnp.uint32(0x846CA68B)
    x = x ^ (x >> 16)
    return x


def _bits_to_uniform(bits):
    """uint32 bits -> uniform float32 in [0, 1) via mantissa fill of [1, 2)."""
    mant = (bits >> 9) | jnp.uint32(0x3F800000)
    return lax.bitcast_convert_type(mant, jnp.float32) - jnp.float32(1.0)


def _rand_combine_kernel(seed_ref, out_ref):
    block_rows, lanes = out_ref.shape
    pid = pl.program_id(0).astype(jnp.uint32)

    # Global flat element index for this tile -> per-block distinct streams.
    row = lax.broadcasted_iota(jnp.uint32, (block_rows, lanes), 0)
    col = lax.broadcasted_iota(jnp.uint32, (block_rows, lanes), 1)
    idx = pid * jnp.uint32(block_rows * lanes) + row * jnp.uint32(lanes) + col

    seed = seed_ref[0].astype(jnp.uint32) * jnp.uint32(0x9E3779B9)

    # Two independent uniform draws, fused into the same pass over the tile.
    a1 = _bits_to_uniform(_mix32(idx ^ seed))
    a2 = _bits_to_uniform(_mix32(idx ^ (seed + jnp.uint32(0x85EBCA6B))))

    out_ref[...] = (jnp.float32(0.3752) * a1 - jnp.float32(0.2977) * a2).astype(
        out_ref.dtype
    )


def _pick_block_rows(rows, target=512):
    """Largest tile (rows of 128 lanes) <= target that divides `rows` and keeps
    the (8, 128) layout rule; small arrays use a single full block."""
    if rows <= target:
        return rows
    for br in range(target, 7, -1):
        if rows % br == 0 and br % 8 == 0:
            return br
    return rows  # fallback: one whole-array block


def compute_a3(shape, dtype, seed: int = 0):
    """Produces the a3 intermediate (`0.3752*rand_like - 0.2977*rand_like`)
    entirely on-device.  x itself is never transferred: only shape/dtype."""
    total = 1
    for d in shape:
        total *= d

    rows = pl.cdiv(total, _LANES)           # pad up to a lane-dense slab
    block_rows = _pick_block_rows(rows)
    grid = (rows // block_rows,)

    seed_arr = jnp.array([seed], dtype=jnp.int32)

    flat = pl.pallas_call(
        _rand_combine_kernel,
        out_shape=jax.ShapeDtypeStruct((rows, _LANES), dtype),
        grid=grid,
        in_specs=[
            pl.BlockSpec(memory_space=pltpu.MemorySpace.SMEM),  # seed scalar
        ],
        out_specs=pl.BlockSpec((block_rows, _LANES), lambda i: (i, 0)),
        compiler_params=pltpu.CompilerParams(
            dimension_semantics=("parallel",),
        ),
    )(seed_arr)

    return flat.reshape(-1)[:total].reshape(shape)


def model_forward(x):
    """Forward pass of the torch module: a1/a2/a3 are dead intermediates and
    the module returns the literal 1, so no device work is done here."""
    # TODO(synk): torch.rand_like's exact Philox bitstream is not reproduced;
    # the a3 intermediate (if wanted) is available via compute_a3(x.shape, x.dtype).
    return 1


if __name__ == "__main__":
    key = jax.random.PRNGKey(0)
    # Small NCHW input consistent with the module (values are never read).
    x = jax.random.normal(key, (2, 4, 16, 16), dtype=jnp.float32)

    # Run the Pallas kernel for the a3 intermediate once and block on it.
    a3 = compute_a3(x.shape, x.dtype, seed=0)
    jax.block_until_ready(a3)
    assert a3.shape == x.shape and a3.dtype == x.dtype
    # a3 = 0.3752*U[0,1) - 0.2977*U[0,1) must lie strictly inside this range.
    assert bool(jnp.all((a3 > -0.2978) & (a3 < 0.3753)))

    # Forward-pass semantics of the original module.
    result = model_forward(x)
    assert result == 1

    print("KERNEL_OK")
</pallas_src>

<mosaic_0001>
module attributes {stable_mosaic.version = 11 : i64} {
  func.func @_rand_combine_kernel(%arg0: i32, %arg1: memref<1xi32, #tpu.memory_space<smem>>, %arg2: memref<16x128xf32, #tpu.memory_space<vmem>>) attributes {dimension_semantics = [#tpu.dimension_semantics<parallel>], iteration_bounds = array<i64: 1>, scalar_prefetch = 0 : i64, scratch_operands = 0 : i64, tpu.core_type = #tpu.core_type<tc>, window_params = [{transform_indices = @transform_0, window_bounds = array<i64: 1>}, {transform_indices = @transform_1, window_bounds = array<i64: 16, 128>}]} {
    %0 = tpu.iota {dimensions = array<i32: 0>} : vector<16x128xi32>
    %1 = tpu.iota {dimensions = array<i32: 1>} : vector<16x128xi32>
    %c2048_i32 = arith.constant 2048 : i32
    %2 = arith.muli %arg0, %c2048_i32 : i32
    %c128_i32 = arith.constant 128 : i32
    %3 = vector.broadcast %c128_i32 : i32 to vector<16x128xi32>
    %4 = arith.muli %0, %3 : vector<16x128xi32>
    %5 = vector.broadcast %2 : i32 to vector<16x128xi32>
    %6 = arith.addi %5, %4 : vector<16x128xi32>
    %7 = arith.addi %6, %1 : vector<16x128xi32>
    %c0 = arith.constant 0 : index
    %8 = memref.load %arg1[%c0] : memref<1xi32, #tpu.memory_space<smem>>
    %c-1640531527_i32 = arith.constant -1640531527 : i32
    %9 = arith.muli %8, %c-1640531527_i32 : i32
    %10 = vector.broadcast %9 : i32 to vector<16x128xi32>
    %11 = arith.xori %7, %10 : vector<16x128xi32>
    %c16_i32 = arith.constant 16 : i32
    %12 = vector.broadcast %c16_i32 : i32 to vector<16x128xi32>
    %13 = arith.shrui %11, %12 : vector<16x128xi32>
    %14 = arith.xori %11, %13 : vector<16x128xi32>
    %c2146121005_i32 = arith.constant 2146121005 : i32
    %15 = vector.broadcast %c2146121005_i32 : i32 to vector<16x128xi32>
    %16 = arith.muli %14, %15 : vector<16x128xi32>
    %c15_i32 = arith.constant 15 : i32
    %17 = vector.broadcast %c15_i32 : i32 to vector<16x128xi32>
    %18 = arith.shrui %16, %17 : vector<16x128xi32>
    %19 = arith.xori %16, %18 : vector<16x128xi32>
    %c-2073254261_i32 = arith.constant -2073254261 : i32
    %20 = vector.broadcast %c-2073254261_i32 : i32 to vector<16x128xi32>
    %21 = arith.muli %19, %20 : vector<16x128xi32>
    %c16_i32_0 = arith.constant 16 : i32
    %22 = vector.broadcast %c16_i32_0 : i32 to vector<16x128xi32>
    %23 = arith.shrui %21, %22 : vector<16x128xi32>
    %24 = arith.xori %21, %23 : vector<16x128xi32>
    %c9_i32 = arith.constant 9 : i32
    %25 = vector.broadcast %c9_i32 : i32 to vector<16x128xi32>
    %26 = arith.shrui %24, %25 : vector<16x128xi32>
    %c1065353216_i32 = arith.constant 1065353216 : i32
    %27 = vector.broadcast %c1065353216_i32 : i32 to vector<16x128xi32>
    %28 = arith.ori %26, %27 : vector<16x128xi32>
    %29 = tpu.bitcast %28 : vector<16x128xi32> -> vector<16x128xf32>
    %cst = arith.constant 1.000000e+00 : f32
    %30 = vector.broadcast %cst : f32 to vector<16x128xf32>
    %31 = arith.subf %29, %30 : vector<16x128xf32>
    %c-2048144789_i32 = arith.constant -2048144789 : i32
    %32 = arith.addi %9, %c-2048144789_i32 : i32
    %33 = vector.broadcast %32 : i32 to vector<16x128xi32>
    %34 = arith.xori %7, %33 : vector<16x128xi32>
    %c16_i32_1 = arith.constant 16 : i32
    %35 = vector.broadcast %c16_i32_1 : i32 to vector<16x128xi32>
    %36 = arith.shrui %34, %35 : vector<16x128xi32>
    %37 = arith.xori %34, %36 : vector<16x128xi32>
    %c2146121005_i32_2 = arith.constant 2146121005 : i32
    %38 = vector.broadcast %c2146121005_i32_2 : i32 to vector<16x128xi32>
    %39 = arith.muli %37, %38 : vector<16x128xi32>
    %c15_i32_3 = arith.constant 15 : i32
    %40 = vector.broadcast %c15_i32_3 : i32 to vector<16x128xi32>
    %41 = arith.shrui %39, %40 : vector<16x128xi32>
    %42 = arith.xori %39, %41 : vector<16x128xi32>
    %c-2073254261_i32_4 = arith.constant -2073254261 : i32
    %43 = vector.broadcast %c-2073254261_i32_4 : i32 to vector<16x128xi32>
    %44 = arith.muli %42, %43 : vector<16x128xi32>
    %c16_i32_5 = arith.constant 16 : i32
    %45 = vector.broadcast %c16_i32_5 : i32 to vector<16x128xi32>
    %46 = arith.shrui %44, %45 : vector<16x128xi32>
    %47 = arith.xori %44, %46 : vector<16x128xi32>
    %c9_i32_6 = arith.constant 9 : i32
    %48 = vector.broadcast %c9_i32_6 : i32 to vector<16x128xi32>
    %49 = arith.shrui %47, %48 : vector<16x128xi32>
    %c1065353216_i32_7 = arith.constant 1065353216 : i32
    %50 = vector.broadcast %c1065353216_i32_7 : i32 to vector<16x128xi32>
    %51 = arith.ori %49, %50 : vector<16x128xi32>
    %52 = tpu.bitcast %51 : vector<16x128xi32> -> vector<16x128xf32>
    %cst_8 = arith.constant 1.000000e+00 : f32
    %53 = vector.broadcast %cst_8 : f32 to vector<16x128xf32>
    %54 = arith.subf %52, %53 : vector<16x128xf32>
    %cst_9 = arith.constant 3.752000e-01 : f32
    %55 = vector.broadcast %cst_9 : f32 to vector<16x128xf32>
    %56 = arith.mulf %55, %31 : vector<16x128xf32>
    %cst_10 = arith.constant 2.977000e-01 : f32
    %57 = vector.broadcast %cst_10 : f32 to vector<16x128xf32>
    %58 = arith.mulf %57, %54 : vector<16x128xf32>
    %59 = arith.subf %56, %58 : vector<16x128xf32>
    %c0_11 = arith.constant 0 : index
    %c0_12 = arith.constant 0 : index
    %60 = vector.load %arg2[%c0_11, %c0_12] : memref<16x128xf32, #tpu.memory_space<vmem>>, vector<16x128xf32>
    tpu.vector_store %arg2[%c0_11, %c0_12], %59 {strides = array<i32>} : memref<16x128xf32, #tpu.memory_space<vmem>>, vector<16x128xf32>,
    return
  }
  func.func @transform_0(%arg0: i32) -> i32 {
    %c0_i32 = arith.constant 0 : i32
    %c0_i32_0 = arith.constant 0 : i32
    return %c0_i32 : i32
  }
  func.func @transform_1(%arg0: i32) -> (i32, i32) {
    %c0_i32 = arith.constant 0 : i32
    %c0_i32_0 = arith.constant 0 : i32
    return %arg0, %c0_i32 : i32, i32
  }
}

</mosaic_0001>

<bundles_post_ra>
// kernel: tpu_custom_call.1
= control target key start
LH: loop header
LB: loop body
LE: loop exit
PB: predicated region body
PF: predicated region fallthrough
CT: control target
= control target key end

     0   :  { %v10_v0 = vlaneseq  ;;  %s158_s0 = inlined_call_operand.<no memory space> [shape: s32[1], index: 0, kind: input, shape index: {}]   ;;  %s159_s1 = inlined_call_operand.hbm [shape: f32[16,128], index: 1, kind: output, shape index: {}]  }
   0x1   :  { %s24_s8 = smul.u32 2654435769, %s158_s0 }
   0x2   :  { %7 = vsyncpa [#allocation4], 0  ;;  %v11_v1 = vshrl.u32 %v10_v0, 7  ;;  %v14_v2 = vand.u32 127, %v10_v0  ;;  %s139_s0 = smov [#allocation3]   ;;  %s94_s13 = sshll.u32 %s159_s1, 4  ;;  %s95_s13 = int_to_ptr.hbm [resolvable:$true] %s94_s13 }
   0x3   :  { %s52_s9 = sadd.s32 2246822507, %s24_s8  ;;  %v25_v5 = vstv %s24_s8  ;;  %s92_s10 = sshll.u32 %s139_s0, 4  ;;  %s93_s10 = int_to_ptr.vmem [resolvable:$true] %s92_s10 }
   0x4   :  { %v16_v3 = vmul.u32 128, %v11_v1  ;;  %v12_v4 = vadd.s32 8, %v11_v1  ;;  %v53_v6 = vstv %s52_s9  ;;  %s140_s14 = smov 128   ;;  %s141_s15 = smov 8  }
   0x6   :  { %v21_v7 = vadd.s32 %v16_v3, %v14_v2  ;;  %v17_v8 = vmul.u32 128, %v12_v4 }
   0x8   :  { %v26_v9 = vxor.u32 %v25_v5, %v21_v7  ;;  %v54_v10 = vxor.u32 %v53_v6, %v21_v7  ;;  %v22_v11 = vadd.s32 %v17_v8, %v14_v2 }
   0xa   :  { %v28_v12 = vshrl.u32 %v26_v9, 16  ;;  %v56_v13 = vshrl.u32 %v54_v10, 16  ;;  %v27_v14 = vxor.u32 %v25_v5, %v22_v11  ;;  %v55_v15 = vxor.u32 %v53_v6, %v22_v11 }
   0xc   :  { %v30_v16 = vxor.u32 %v28_v12, %v26_v9  ;;  %v58_v17 = vxor.u32 %v56_v13, %v54_v10  ;;  %v29_v18 = vshrl.u32 %v27_v14, 16  ;;  %v57_v19 = vshrl.u32 %v55_v15, 16 }
   0xe   :  { %v32_v20 = vmul.u32 2146121005, %v30_v16  ;;  %v60_v21 = vmul.u32 2146121005, %v58_v17  ;;  %v31_v22 = vxor.u32 %v29_v18, %v27_v14  ;;  %v59_v23 = vxor.u32 %v57_v19, %v55_v15 }
  0x10   :  { %v34_v24 = vshrl.u32 %v32_v20, 15  ;;  %v62_v25 = vshrl.u32 %v60_v21, 15  ;;  %v33_v26 = vmul.u32 2146121005, %v31_v22  ;;  %v61_v27 = vmul.u32 2146121005, %v59_v23 }
  0x12   :  { %v36_v28 = vxor.u32 %v34_v24, %v32_v20  ;;  %v64_v29 = vxor.u32 %v62_v25, %v60_v21  ;;  %v35_v30 = vshrl.u32 %v33_v26, 15  ;;  %v63_v31 = vshrl.u32 %v61_v27, 15 }
  0x14   :  { %v38_v32 = vmul.u32 2221713035, %v36_v28  ;;  %v66_v33 = vmul.u32 2221713035, %v64_v29  ;;  %v37_v34 = vxor.u32 %v35_v30, %v33_v26  ;;  %v65_v35 = vxor.u32 %v63_v31, %v61_v27 }
  0x16   :  { %v40_v36 = vshrl.u32 %v38_v32, 16  ;;  %v68_v37 = vshrl.u32 %v66_v33, 16  ;;  %v39_v38 = vmul.u32 2221713035, %v37_v34  ;;  %v67_v39 = vmul.u32 2221713035, %v65_v35 }
  0x18   :  { %v42_v40 = vxor.u32 %v40_v36, %v38_v32  ;;  %v70_v41 = vxor.u32 %v68_v37, %v66_v33  ;;  %v41_v42 = vshrl.u32 %v39_v38, 16  ;;  %v69_v43 = vshrl.u32 %v67_v39, 16 }
  0x1a   :  { %v44_v44 = vshrl.u32 %v42_v40, 9  ;;  %v72_v45 = vshrl.u32 %v70_v41, 9  ;;  %v43_v46 = vxor.u32 %v41_v42, %v39_v38  ;;  %v71_v47 = vxor.u32 %v69_v43, %v67_v39 }
  0x1c   :  { %v46_v48 = vor.u32 1065353216, %v44_v44  ;;  %v74_v49 = vor.u32 1065353216, %v72_v45  ;;  %v45_v50 = vshrl.u32 %v43_v46, 9  ;;  %v73_v51 = vshrl.u32 %v71_v47, 9 }
  0x1e   :  { %v106_v52 = vadd.f32 -1.0, %v46_v48  ;;  %v108_v53 = vadd.f32 -1.0, %v74_v49  ;;  %v47_v54 = vor.u32 1065353216, %v45_v50  ;;  %v75_v55 = vor.u32 1065353216, %v73_v51 }
  0x20   :  { %v80_v56 = vmul.f32 0.3752, %v106_v52  ;;  %v82_v57 = vmul.f32 0.2977, %v108_v53  ;;  %v107_v58 = vadd.f32 -1.0, %v47_v54  ;;  %v109_v59 = vadd.f32 -1.0, %v75_v55 }
  0x22   :  { %v84_v60 = vsub.f32 %v80_v56, %v82_v57  ;;  %v81_v61 = vmul.f32 0.3752, %v107_v58  ;;  %v83_v62 = vmul.f32 0.2977, %v109_v59 }
  0x24   :  { %86 = vst [vmem:[#allocation3] sm:$0xff] %v84_v60  ;;  %v85_v63 = vsub.f32 %v81_v61, %v83_v62 }
  0x26   :  { %87 = vst [vmem:[#allocation3 + $0x8] sm:$0xff] %v85_v63 }
  0x27   :  { %100 = dma.vmem_to_hbm [thread:$0]  %s93_s10, 256, %s95_s13, [#allocation4], %s140_s14, %s140_s14, %s141_s15  }
  0x28   :  { %137 = dma.done.wait [#allocation4], 256  }
  0x29   :  { %138 = vsyncadd [#allocation4], 4294967040 }
  0x2a   :  { %105 = vsyncpa [#allocation4], 1 }

</bundles_post_ra>
